<compile_context>
chip_gen: v5e
topology: v5e:2x2
jax: 0.10.0
libtpu: 0.0.40
codegen_flags: <defaults>
</compile_context>

<pallas_src>
import jax
import jax.numpy as jnp
from jax.experimental import pallas as pl
from jax.experimental.pallas import tpu as pltpu


def _rope_kernel(cos_ref, sin_ref, x_ref, o_ref):
    # cos_ref, sin_ref: (TS, H) float32, shared across the batch axis (resident
    #                   in VMEM across the inner batch grid loop).
    # x_ref, o_ref:     (TS, D), leading batch block dim squeezed away.
    half = cos_ref.shape[-1]
    cos = cos_ref[...]
    sin = sin_ref[...]
    x = x_ref[...].astype(jnp.float32)
    x1 = x[:, :half]
    x2 = x[:, half:]
    # Two half-width stores instead of split + concatenate (no (TS, D) temp).
    o_ref[:, :half] = (x1 * cos - x2 * sin).astype(o_ref.dtype)
    o_ref[:, half:] = (x2 * cos + x1 * sin).astype(o_ref.dtype)


def _choose_seq_tile(S, D, itemsize):
    """Largest multiple-of-8 divisor of S with ~<=1 MiB of x per block."""
    target_rows = max(8, (1 << 20) // max(1, D * itemsize))
    if S <= target_rows:
        return S
    t = (min(S, target_rows) // 8) * 8
    while t >= 8:
        if S % t == 0:
            return t
        t -= 8
    return S  # no clean multiple-of-8 divisor -> full-S block (still legal)


def rope_forward(x, residue_index, inv_freq, *, seq_tile=None):
    """Apply RoPE to x of shape (B, S, D) along seq_dim=1."""
    B, S, D = x.shape
    H = D // 2
    assert D % 2 == 0
    assert inv_freq.shape == (H,)
    assert residue_index.shape == (S,)

    # Hoisted sin/cos tables: O(S*H) transcendental work done once, outside the kernel.
    sinusoid = (residue_index.astype(jnp.float32)[:, None]
                * inv_freq.astype(jnp.float32)[None, :])            # (S, H)
    sin = jnp.sin(sinusoid)
    cos = jnp.cos(sinusoid)

    itemsize = jnp.dtype(x.dtype).itemsize
    TS = seq_tile if seq_tile is not None else _choose_seq_tile(S, D, itemsize)
    assert S % TS == 0

    # Explicit VMEM budget: double-buffered (x + out + cos + sin) blocks + headroom.
    block_bytes = TS * D * itemsize * 2 + TS * H * 4 * 2
    vmem_limit = int(max(4 << 20, min(32 << 20, 4 * block_bytes)))

    return pl.pallas_call(
        _rope_kernel,
        out_shape=jax.ShapeDtypeStruct((B, S, D), x.dtype),
        grid_spec=pltpu.PrefetchScalarGridSpec(
            num_scalar_prefetch=0,
            # s outer, b inner: cos/sin block index is constant over the inner
            # loop, so the pipeline keeps those tiles resident (no re-DMA per b).
            grid=(S // TS, B),
            in_specs=[
                pl.BlockSpec((TS, H), lambda s, b: (s, 0)),                    # cos (shared over B)
                pl.BlockSpec((TS, H), lambda s, b: (s, 0)),                    # sin (shared over B)
                pl.BlockSpec((pl.Squeezed(), TS, D), lambda s, b: (b, s, 0)),  # x tile
            ],
            out_specs=pl.BlockSpec((pl.Squeezed(), TS, D), lambda s, b: (b, s, 0)),
        ),
        compiler_params=pltpu.CompilerParams(
            dimension_semantics=("parallel", "parallel"),
            vmem_limit_bytes=vmem_limit,
        ),
    )(cos, sin, x)


def rope_reference(x, residue_index, inv_freq):
    """Pure-JAX reference mirroring the PyTorch module (seq_dim=1)."""
    sinusoid = jnp.einsum("s,d->sd", residue_index.astype(jnp.float32), inv_freq)
    sin = jnp.sin(sinusoid)[None]            # (1, S, H)
    cos = jnp.cos(sinusoid)[None]
    half = x.shape[-1] // 2
    x1, x2 = x[..., :half], x[..., half:]
    return jnp.concatenate([x1 * cos - x2 * sin, x2 * cos + x1 * sin], axis=-1)


if __name__ == "__main__":
    key = jax.random.PRNGKey(0)
    kx1, kx2 = jax.random.split(key)

    # Case 1: module-sized demo shapes (input_dim = 32 -> half_size = 16).
    B, S, D = 2, 8, 32
    half = D // 2
    x = jax.random.normal(kx1, (B, S, D), dtype=jnp.float32)
    residue_index = jnp.arange(S, dtype=jnp.float32)
    freq_seq = jnp.arange(half, dtype=jnp.float32) / float(half)
    inv_freq = jnp.power(10000.0, -freq_seq)

    out = jax.block_until_ready(rope_forward(x, residue_index, inv_freq))
    ref = rope_reference(x, residue_index, inv_freq)
    assert out.shape == (B, S, D)
    assert jnp.allclose(out, ref, atol=1e-5, rtol=1e-5)

    # Case 2: exercise the tiled-sequence path (multiple seq blocks per batch,
    # batch innermost so the sin/cos tiles stay resident across b).
    B2, S2 = 2, 64
    x2 = jax.random.normal(kx2, (B2, S2, D), dtype=jnp.float32)
    residue_index2 = jnp.arange(S2, dtype=jnp.float32)
    out2 = jax.block_until_ready(
        rope_forward(x2, residue_index2, inv_freq, seq_tile=8))
    ref2 = rope_reference(x2, residue_index2, inv_freq)
    assert out2.shape == (B2, S2, D)
    assert jnp.allclose(out2, ref2, atol=1e-5, rtol=1e-5)

    print("KERNEL_OK")
</pallas_src>

<mosaic_0001>
module attributes {stable_mosaic.version = 11 : i64} {
  func.func @_rope_kernel(%arg0: i32, %arg1: i32, %arg2: memref<8x16xf32, #tpu.memory_space<vmem>>, %arg3: memref<8x16xf32, #tpu.memory_space<vmem>>, %arg4: memref<1x8x32xf32, #tpu.memory_space<vmem>>, %arg5: memref<1x8x32xf32, #tpu.memory_space<vmem>>) attributes {dimension_semantics = [#tpu.dimension_semantics<parallel>, #tpu.dimension_semantics<parallel>], iteration_bounds = array<i64: 1, 2>, scalar_prefetch = 0 : i64, scratch_operands = 0 : i64, tpu.core_type = #tpu.core_type<tc>, window_params = [{transform_indices = @transform_0, window_bounds = array<i64: 8, 16>}, {transform_indices = @transform_1, window_bounds = array<i64: 8, 16>}, {transform_indices = @transform_2, window_bounds = array<i64: 1, 8, 32>}, {transform_indices = @transform_3, window_bounds = array<i64: 1, 8, 32>}]} {
    %c0 = arith.constant 0 : index
    %c0_0 = arith.constant 0 : index
    %0 = vector.load %arg2[%c0, %c0_0] : memref<8x16xf32, #tpu.memory_space<vmem>>, vector<8x16xf32>
    %c0_1 = arith.constant 0 : index
    %c0_2 = arith.constant 0 : index
    %1 = vector.load %arg3[%c0_1, %c0_2] : memref<8x16xf32, #tpu.memory_space<vmem>>, vector<8x16xf32>
    %c0_3 = arith.constant 0 : index
    %c0_4 = arith.constant 0 : index
    %c0_5 = arith.constant 0 : index
    %2 = vector.load %arg4[%c0_3, %c0_4, %c0_5] : memref<1x8x32xf32, #tpu.memory_space<vmem>>, vector<1x8x32xf32>
    %3 = vector.shape_cast %2 : vector<1x8x32xf32> to vector<8x32xf32>
    %4 = vector.extract_strided_slice %3 {offsets = [0, 0], sizes = [8, 16], strides = [1, 1]} : vector<8x32xf32> to vector<8x16xf32>
    %5 = vector.extract_strided_slice %3 {offsets = [0, 16], sizes = [8, 16], strides = [1, 1]} : vector<8x32xf32> to vector<8x16xf32>
    %6 = arith.mulf %4, %0 : vector<8x16xf32>
    %7 = arith.mulf %5, %1 : vector<8x16xf32>
    %8 = arith.subf %6, %7 : vector<8x16xf32>
    %c0_6 = arith.constant 0 : index
    %c0_7 = arith.constant 0 : index
    %c0_8 = arith.constant 0 : index
    %9 = vector.load %arg5[%c0_6, %c0_7, %c0_8] : memref<1x8x32xf32, #tpu.memory_space<vmem>>, vector<1x8x16xf32>
    %10 = vector.shape_cast %9 : vector<1x8x16xf32> to vector<8x16xf32>
    %11 = vector.shape_cast %8 : vector<8x16xf32> to vector<1x8x16xf32>
    tpu.vector_store %arg5[%c0_6, %c0_7, %c0_8], %11 {strides = array<i32>} : memref<1x8x32xf32, #tpu.memory_space<vmem>>, vector<1x8x16xf32>,
    %12 = arith.mulf %5, %0 : vector<8x16xf32>
    %13 = arith.mulf %4, %1 : vector<8x16xf32>
    %14 = arith.addf %12, %13 : vector<8x16xf32>
    %c0_9 = arith.constant 0 : index
    %c0_10 = arith.constant 0 : index
    %c16 = arith.constant 16 : index
    %15 = vector.load %arg5[%c0_9, %c0_10, %c16] : memref<1x8x32xf32, #tpu.memory_space<vmem>>, vector<1x8x16xf32>
    %16 = vector.shape_cast %15 : vector<1x8x16xf32> to vector<8x16xf32>
    %17 = vector.shape_cast %14 : vector<8x16xf32> to vector<1x8x16xf32>
    tpu.vector_store %arg5[%c0_9, %c0_10, %c16], %17 {strides = array<i32>} : memref<1x8x32xf32, #tpu.memory_space<vmem>>, vector<1x8x16xf32>,
    return
  }
  func.func @transform_0(%arg0: i32, %arg1: i32) -> (i32, i32) {
    %c0_i32 = arith.constant 0 : i32
    %c0_i32_0 = arith.constant 0 : i32
    return %arg0, %c0_i32 : i32, i32
  }
  func.func @transform_1(%arg0: i32, %arg1: i32) -> (i32, i32) {
    %c0_i32 = arith.constant 0 : i32
    %c0_i32_0 = arith.constant 0 : i32
    return %arg0, %c0_i32 : i32, i32
  }
  func.func @transform_2(%arg0: i32, %arg1: i32) -> (i32, i32, i32) {
    %c0_i32 = arith.constant 0 : i32
    %c0_i32_0 = arith.constant 0 : i32
    return %arg1, %arg0, %c0_i32 : i32, i32, i32
  }
  func.func @transform_3(%arg0: i32, %arg1: i32) -> (i32, i32, i32) {
    %c0_i32 = arith.constant 0 : i32
    %c0_i32_0 = arith.constant 0 : i32
    return %arg1, %arg0, %c0_i32 : i32, i32, i32
  }
}

</mosaic_0001>

<bundles_post_ra>
// kernel: tpu_custom_call.1
= control target key start
LH: loop header
LB: loop body
LE: loop exit
PB: predicated region body
PF: predicated region fallthrough
CT: control target
= control target key end

     0   :  { %8 = vsyncpa [#allocation3], 0  ;;  %s858_s0 = inlined_call_operand.hbm [shape: f32[8,16], index: 0, kind: input, shape index: {}]   ;;  %s859_s1 = inlined_call_operand.hbm [shape: f32[8,16], index: 1, kind: input, shape index: {}]   ;;  %s860_s2 = inlined_call_operand.hbm [shape: f32[2,8,32], index: 2, kind: input, shape index: {}]   ;;  %s861_s3 = inlined_call_operand.hbm [shape: f32[2,8,32], index: 3, kind: output, shape index: {}]  }
   0x1   :  { %9 = vsyncpa [#allocation6], 0 }
   0x2   :  { %10 = vsyncpa [#allocation4], 0 }
   0x3   :  { %12 = vsyncpa [#allocation4 + $0x1], 0  ;;  %s703_s12 = smov 0   ;;  %s705_s13 = smov 0  }
   0x4   :  { %s707_s14 = smov 0   ;;  %s709_s15 = smov 0  }
   0x5   :  { %s711_s16 = smov 0   ;;  %s713_s17 = smov 0  }
   0x6 LB: > { %s734_s18 = sadd.s32 4294967295, %s677_s17   ;;  %s396_s19 = sadd.s32 4294967294, %s677_s17   ;;  %s677_s17 = sphi %s713_s17, %s18_s17   ;;  %s673_s16 = sphi %s711_s16, %s871_s16   ;;  %s669_s15 = sphi %s709_s15, %s870_s15   ;;  %s665_s14 = sphi %s707_s14, %s869_s14   ;;  %s661_s13 = sphi %s705_s13, %s868_s13   ;;  %s657_s12 = sphi %s703_s12, %s867_s12  }
   0x7   : > { %p104_p0 = scmp.ne.s32.totalorder %s661_s13, %s657_s12  ;;  %p105_p1 = scmp.eq.s32.totalorder %s734_s18, 0 }
   0x8   : > { %p130_p2 = scmp.eq.s32.totalorder %s734_s18, 1  ;;  %p136_p3 = scmp.eq.s32.totalorder %s396_s19, 1 }
   0x9   : > { %p743_p4 = por %p105_p1, %p104_p0  ;;  %p397_p5 = scmp.ge.s32.totalorder %s677_s17, 1 }
   0xa   : > { %p748_p6 = por %p136_p3, %p104_p0  ;;  %p143_p7 = scmp.lt.s32.totalorder %s677_s17, 3 }
   0xb   : > { %s157_s24 = sshll.u32 %s858_s0, 4  ;;  %p400_p9 = scmp.ge.s32.totalorder %s677_s17, 2  ;;  %s158_s24 = int_to_ptr.hbm [resolvable:$true] %s157_s24 }
   0xc   : > { %p756_p8 = pnand %p397_p5, %p143_p7  ;;  %s679_s26 = smov [#allocation2]  }
   0xd   : > { %s159_s27 = sshll.u32 %s679_s26, 4  ;;  %s171_s30 = sshll.u32 %s859_s1, 4  ;;  %s160_s27 = int_to_ptr.vmem [resolvable:$true] %s159_s27  ;;  %s172_s30 = int_to_ptr.hbm [resolvable:$true] %s171_s30 }
   0xe   : > { %p424_p10 = pneg %p756_p8  ;;  %s680_s4 = smov [#allocation5]  }
   0xf   : > { %s173_s5 = sshll.u32 %s680_s4, 4  ;;  %s27_s6 = sadd.s32 1, %s673_s16  ;;  %s174_s5 = int_to_ptr.vmem [resolvable:$true] %s173_s5 }
  0x10   : > { %p425_p11 = pnand %p424_p10, %p105_p1  ;;  %s91_s7 = sadd.s32 1, %s665_s14 }
  0x11   : > { %p28_p12 = scmp.ge.s32.totalorder %s27_s6, 2  ;;  %p98_p13 = scmp.ne.s32.totalorder %s665_s14, %s661_s13 }
  0x12   : > { %427 = dma.hbm_to_vmem [thread:$0]  (!%p425_p11), %s158_s24, 128, %s160_s27, [#allocation3]  }
  0x13   : > { %430 = dma.hbm_to_vmem [thread:$0]  (!%p425_p11), %s172_s30, 128, %s174_s5, [#allocation6]  }
  0x14   : > { %p99_p0 = scmp.eq.s32.totalorder %s677_s17, 0  ;;  %p441_p3 = scmp.lt.s32.totalorder %s677_s17, 2 }
  0x15   : > { %s873_s6 = smov (%p28_p12, %s27_s6), 0  ;;  %p782_p7 = por %p130_p2, %p98_p13 }
  0x16   : > { %p776_p5 = por %p99_p0, %p98_p13  ;;  %s86_s10 = ssub.s32 %s673_s16, %s873_s6 }
  0x17   : > { %s184_s11 = sand.u32 1, %s677_s17   ;;  %p89_p10 = scmp.eq.s32.totalorder %s86_s10, 0 }
  0x18   : > { %s186_s19 = sand.u32 1, %s665_s14   ;;  %s402_s22 = sshll.u32 %s673_s16, 3 }
  0x19   : > { %s792_s23 = scalar_select %p89_p10, %s665_s14, %s91_s7  }
  0x1a   : > { %s401_s24 = sshll.u32 %s186_s19, 3  ;;  %s193_s28 = scalar_lea.hbm %s860_s2, %s402_s22 }
  0x1b   : > { %s195_s29 = sshll.u32 %s193_s28, 4  ;;  %s188_s30 = scalar_lea.vmem [#allocation7], %s401_s24  ;;  %s196_s29 = int_to_ptr.hbm [resolvable:$true] %s195_s29 }
  0x1c   : > { %s197_s4 = sshll.u32 %s188_s30, 4  ;;  %p432_p2 = pnand %p441_p3, %p776_p5  ;;  %s198_s4 = int_to_ptr.vmem [resolvable:$true] %s197_s4 }
  0x1d   : > { %s185_s5 = scalar_lea.sflag [#allocation3], %s184_s11  ;;  %206 = sbr.rel (%p756_p8) target bundleno = 287 (0x11f), region = 32 }
  0x1e   : > { %434 = dma.hbm_to_vmem [thread:$0]  (!%p432_p2), %s196_s29, 128, %s198_s4, %s185_s5  }
  0x22   : > { %640 = dma.done.wait (%p105_p1), [#allocation3], 128  }
  0x23   : > { %642 = vsyncadd (%p105_p1), [#allocation3], 4294967168 }
  0x24   : > { %644 = dma.done.wait (%p105_p1), [#allocation6], 128  }
  0x25   : > { %646 = vsyncadd (%p105_p1), [#allocation6], 4294967168  ;;  %s218_s7 = sand.u32 1, %s734_s18   ;;  %s220_s8 = sand.u32 1, %s661_s13  }
  0x26   : > { %s406_s25 = sshll.u32 %s220_s8, 3  ;;  %s219_s10 = scalar_lea.sflag [#allocation3], %s218_s7 }
  0x27   : > { %s222_s11 = scalar_lea.vmem [#allocation7], %s406_s25 }
  0x28   : > { %648 = dma.done.wait (%p743_p4), %s219_s10, 128  }
  0x29   : > { %650 = vsyncadd (%p743_p4), %s219_s10, 4294967168  ;;  %v247_v0 = vld [vmem:[#allocation5] sm:$0xff]  ;;  %s681_s19 = smov 16   ;;  %v246_v1 = vld [vmem:[#allocation2] sm:$0xff]  ;;  %s682_s18 = smov 112   ;;  %vm260_vm0 = vcmask 130048  }
  0x2a   : > { %251 = vrot.lane.b32.xlu0 %v247_v0, %s681_s19  ;;  %v248_v2 = vld [vmem:[%s222_s11] sm:$0xff]  ;;  %s409_s22 = sshll.u32 %s669_s15, 3  ;;  %s245_s20 = scalar_lea.vmem [#allocation8], %s406_s25  ;;  %vm273_vm1 = vcmask 261248  }
  0x2b   : > { %v267_v5 = vmul.f32 %v248_v2, %v247_v0  ;;  %v249_v6 = vmul.f32 %v248_v2, %v246_v1  ;;  %s287_s27 = scalar_lea.hbm %s861_s3, %s409_s22  ;;  %s289_s28 = sshll.u32 %s245_s20, 4  ;;  %s290_s28 = int_to_ptr.vmem [resolvable:$true] %s289_s28 }
  0x2c   : > { %s291_s29 = sshll.u32 %s287_s27, 4  ;;  %s276_s15 = scalar_lea.sflag [#allocation4], %s220_s8  ;;  %s292_s29 = int_to_ptr.hbm [resolvable:$true] %s291_s29 }
  0x2d   : > { %s601_s30 = sshra.s32 %s292_s29, 4  ;;  %s607_s25 = scalar_lea.hbm %s861_s3, 16  ;;  %s602_s30 = int_to_ptr.hbm [resolvable:$true] %s601_s30 }
  0x2e   : > { %s603_s4 = scalar_lea.hbm %s602_s30, 8  ;;  %p608_p11 = scmp.lt.s32.totalorder %s602_s30, %s861_s3 }
  0x2f   : > { %p604_p1 = scmp.ne.s32.totalorder %s602_s30, %s603_s4  ;;  %p609_p12 = scmp.lt.s32.totalorder %s607_s25, %s603_s4 }
  0x31   : > { %p605_p4 = pnand %p604_p1, %p782_p7  ;;  %p610_p13 = por %p609_p12, %p608_p11 }
  0x32   : > { %263 = vrot.lane.b32.xlu0 %v246_v1, %s681_s19 }
  0x33   : > { %p606_p8 = pneg %p605_p4 }
  0x35   : > { %p611_p0 = pnand %p610_p13, %p606_p8 }
  0x9c   : > { %v252_v3 = vpop.permute.xlu0 %251 }
  0x9d   : > { %v254_v4 = vmul.f32 %v252_v3, %v248_v2 }
  0x9f   : > { %256 = vrot.lane.b32.xlu1 %v254_v4, %s682_s18 }
  0xa4   : > { %v264_v9 = vpop.permute.xlu0 %263 }
  0xa5   : > { %v266_v10 = vmul.f32 %v264_v9, %v248_v2 }
  0xa7   : > { %269 = vrot.lane.b32.xlu1 %v267_v5, %s681_s19 }
 0x111   : > { %v257_v7 = vpop.permute.xlu1 %256 }
 0x112   : > { %v259_v8 = vsub.f32 %v249_v6, %v257_v7 }
 0x114   : > { %261 = vst.msk [vmem:[%s245_s20] sm:$0xff] %vm260_vm0, %v259_v8 }
 0x119   : > { %v270_v11 = vpop.permute.xlu1 %269 }
 0x11a   : > { %v272_v12 = vadd.f32 %v270_v11, %v266_v10 }
 0x11c   : > { %274 = vst.msk [vmem:[%s245_s20] sm:$0xff] %vm273_vm1, %v272_v12 }
 0x11d   : > { %614 = shalt.err (!%p611_p0)
}
 0x11e   : > { %422 = dma.vmem_to_hbm [thread:$0]  (%p782_p7), %s290_s28, 128, %s292_s29, %s276_s15  }
 0x11f PF: > { %s303_s8 = sand.u32 1, %s657_s12   ;;  %p436_p3 = pnand %p400_p9, %p748_p6 }
 0x120   : > { %s304_s19 = scalar_lea.sflag [#allocation4], %s303_s8 }
 0x121   : > { %p437_p5 = pneg %p436_p3 }
 0x123   : > { %652 = dma.done.wait (%p437_p5), %s304_s19, 128  }
 0x124   : > { %654 = vsyncadd (%p437_p5), %s304_s19, 4294967168  ;;  %s18_s17 = sadd.s32 1, %s677_s17   ;;  %s867_s12 = smov %s661_s13 }
 0x125   : > { %p15_p10 = scmp.ge.s32.totalorder %s18_s17, 4   ;;  %s868_s13 = smov %s665_s14 }
 0x126   : > { %s869_s14 = smov %s792_s23  ;;  %s870_s15 = smov %s673_s16 }
 0x127   : > { %s871_s16 = smov %s873_s6  ;;  %17 = sbr.rel (!%p15_p10) target bundleno = 6 (0x6), region = 86 }
 0x12c   :  { %310 = vsyncpa [#allocation3], 1 }
 0x12d   :  { %312 = vsyncpa [#allocation3 + $0x1], 1 }
 0x12e   :  { %313 = vsyncpa [#allocation6], 1 }
 0x12f   :  { %314 = vsyncpa [#allocation4], 1 }
 0x130   :  { %316 = vsyncpa [#allocation4 + $0x1], 1 }

</bundles_post_ra>
